<compile_context>
chip_gen: v5e
topology: v5e:2x2
jax: 0.10.0
libtpu: 0.0.40
codegen_flags: <defaults>
</compile_context>

<pallas_src>
import jax
import jax.numpy as jnp
from jax import lax
from jax.experimental import pallas as pl
from jax.experimental.pallas import tpu as pltpu

BIT_UNKNOWN_VAL = 0.0    # unknown bits encoded as 0.0 (data bits are +/-1)

# cfg constants (small synthetic shapes)
L = 16                   # cfg.L : number of bits per image
K = 2                    # cfg.K : categories per bit (binary)
HIDDEN = 128             # hidden width of the synthetic net (lane-aligned)
F_IN = 2 * L + 1         # logical net input features: [x, mask, t]
F_OUT = 2 * L + 1        # logical net outputs: [l0 (L) | l1 (L) | logp]
F_IN_PAD = 128           # lane-padded feature width
F_OUT_PAD = 128          # lane-padded net output width
LOGP_COL = 2 * L         # logp column in the ORIGINAL net output slab
XSEL_COL = 64            # x_int packed into feat lanes [64, 80)   (w1 rows zeroed)
MSEL_COL = 80            # mask_select packed into feat lanes [80, 96)
LOGP_COL_FOLDED = L      # logp column in the FOLDED net output slab
LLSUM_LANE = 64          # llsum lives in lanes [64, 128) of the merged output
TILE_N = 2048            # rows per grid step once the batch scales up
MIN_TILE = 16            # bf16 native (16, 128) tile


def _round_up(x, m):
    return ((x + m - 1) // m) * m


# ----------------------------------------------------------------------------- kernel
def _mam_fused_kernel(feat_ref, w1_ref, b1_ref, w2_ref, b2_ref, out_ref):
    """Fused: net forward (2 MXU matmuls, bf16 operands / f32 accum) + binary
    categorical log-prob at x_int, masked by mask_select, summed over L.
    Output: one lane-dense (tile_n, 128) f32 slab, logp in lanes [0,64),
    llsum in lanes [64,128)."""
    feat = feat_ref[...]                                       # bf16 (tile_n, 128)

    # --- net forward ----------------------------------------------------------------
    h = jnp.dot(feat, w1_ref[...], preferred_element_type=jnp.float32)
    h = jnp.maximum(h + b1_ref[...], 0.0)                      # f32 elementwise (v5e-safe)
    out = jnp.dot(h.astype(jnp.bfloat16), w2_ref[...],
                  preferred_element_type=jnp.float32) + b2_ref[...]

    d = out[:, 0:L]                                            # folded (l1 - l0) logits
    logp = out[:, LOGP_COL_FOLDED:LOGP_COL_FOLDED + 1]         # per-row log p(x)

    # x_int / mask_select ride along in feat's padded lanes (w1 rows there are zero)
    sel = feat_ref[:, XSEL_COL:XSEL_COL + 2 * L].astype(jnp.float32)
    xsel = sel[:, 0:L]
    msel = sel[:, L:2 * L]

    # K=2: log_prob(x_int) = -softplus(-(l_sel - l_other)) ; l_sel - l_other = d*(2x-1)
    d_sel = d * (2.0 * xsel - 1.0)
    lp = jnp.minimum(d_sel, 0.0) - jnp.log(1.0 + jnp.exp(-jnp.abs(d_sel)))
    llsum = jnp.sum(lp * msel, axis=-1, keepdims=True)

    # single merged, unmasked, full-lane store
    rows, lanes = out_ref.shape
    lane = lax.broadcasted_iota(jnp.int32, (rows, lanes), dimension=1)
    out_ref[...] = jnp.where(lane < LLSUM_LANE,
                             jnp.broadcast_to(logp, (rows, lanes)),
                             jnp.broadcast_to(llsum, (rows, lanes)))


# ----------------------------------------------------------------------------- wrapper
def mam_net_fused(xs, ms, xsel, msel, params):
    """One fused pallas_call covering every net_forward of MAM.forward plus the
    masked categorical log-likelihood reduction.

    xs, ms     : (n, L) net inputs / masks (all forward rows batched together)
    xsel, msel : (n, L) x_int and mask_select per row (zeros where unused)
    returns    : logp (n,), llsum (n,)
    """
    n = xs.shape[0]
    w1, b1, w2, b2 = params

    # --- param prep (traced once under jit) ------------------------------------------
    # zero inert w1 rows (so the xsel/msel lanes of feat never reach the matmul),
    # fold the binary logit difference + logp column into w2/b2, pre-cast to bf16.
    w1_eff = w1.at[F_IN:, :].set(0.0).astype(jnp.bfloat16)
    w2d = jnp.zeros_like(w2)
    w2d = w2d.at[:, 0:L].set(w2[:, L:2 * L] - w2[:, 0:L])
    w2d = w2d.at[:, LOGP_COL_FOLDED].set(w2[:, LOGP_COL])
    b2d = jnp.zeros_like(b2)
    b2d = b2d.at[:, 0:L].set(b2[:, L:2 * L] - b2[:, 0:L])
    b2d = b2d.at[:, LOGP_COL_FOLDED].set(b2[:, LOGP_COL])
    w2_eff = w2d.astype(jnp.bfloat16)

    # --- feature slab (bf16): [x | mask | t | 0-pad | xsel | msel | 0-pad] -----------
    # all values (+/-1, 0/1, k/L) are exact in bf16.
    mask_f = ms.astype(jnp.float32)
    t = jnp.sum(mask_f, axis=-1, keepdims=True) * (1.0 / L)    # sum_except_batch(mask)/L
    feat_core = jnp.concatenate(
        [xs.astype(jnp.float32), mask_f, t,
         jnp.zeros((n, XSEL_COL - F_IN), jnp.float32),
         xsel.astype(jnp.float32), msel.astype(jnp.float32)],
        axis=-1).astype(jnp.bfloat16)                          # (n, MSEL_COL + L)

    # tile rows to the bf16 (16, 128) tile; big tiles amortize per-step overhead
    tile_n = min(_round_up(n, MIN_TILE), TILE_N)
    n_pad = _round_up(n, tile_n)
    if n_pad // tile_n < 2 and tile_n >= 2 * MIN_TILE:
        # keep >= 2 grid steps so both v7x TensorCores get work (near-free elsewhere)
        tile_n = _round_up(tile_n // 2, MIN_TILE)
        n_pad = _round_up(n, tile_n)

    feat = jnp.pad(feat_core,
                   ((0, n_pad - n), (0, F_IN_PAD - feat_core.shape[1])))

    grid = (n_pad // tile_n,)
    out = pl.pallas_call(
        _mam_fused_kernel,
        out_shape=jax.ShapeDtypeStruct((n_pad, 128), jnp.float32),
        grid=grid,
        in_specs=[
            pl.BlockSpec((tile_n, F_IN_PAD), lambda i: (i, 0)),   # feat (bf16, tiled rows)
            pl.BlockSpec((F_IN_PAD, HIDDEN), lambda i: (0, 0)),   # w1 (bf16, VMEM-resident)
            pl.BlockSpec((1, HIDDEN), lambda i: (0, 0)),          # b1 (f32)
            pl.BlockSpec((HIDDEN, F_OUT_PAD), lambda i: (0, 0)),  # w2 folded (bf16)
            pl.BlockSpec((1, F_OUT_PAD), lambda i: (0, 0)),       # b2 folded (f32)
        ],
        out_specs=pl.BlockSpec((tile_n, 128), lambda i: (i, 0)),
        compiler_params=pltpu.CompilerParams(
            dimension_semantics=("parallel",),        # batch tiles shard across TCs
            vmem_limit_bytes=32 * 1024 * 1024),       # safe on v5e/v6e/v7x
    )(feat, w1_eff, b1, w2_eff, b2d)

    return out[:n, 0], out[:n, LLSUM_LANE]


# ----------------------------------------------------------------------------- MAM.forward
def mam_forward(x, params, key):
    """MAM.forward(x) -> (loss, logp_real, log_z, mb_loss, mb_loss_begin).
    cfg.include_onpolicy = False, cfg.gen_order = 'random', cfg.binary = True."""
    B = x.shape[0]
    key_order, key_ind = jax.random.split(key)

    # sample_order: random per-row permutation of [0, L)
    rand_order = jnp.argsort(
        jax.random.uniform(key_order, (B, L)), axis=-1
    ).astype(jnp.int32)

    # sample_mb_mask(..., sample_method='random')
    ind = jax.random.randint(key_ind, (B, 1), 1, L + 1)
    mask_select_prev = rand_order == (ind - 1)
    mask_prev = rand_order < (ind - 1)
    mask_curr = rand_order < ind

    allbits_unknown = jnp.full((1, L), BIT_UNKNOWN_VAL, jnp.float32)
    allbits_unknown_mask = jnp.zeros((1, L), dtype=bool)
    mask_full = jnp.ones((B, L), dtype=bool)

    x_mask = x * mask_curr + allbits_unknown * (~mask_curr)
    x_mask_prev = x * mask_prev + allbits_unknown * (~mask_prev)

    # Batch every net_forward call of MAM.forward into one fused kernel invocation:
    #   rows [0:B]        -> eval_ll on x (full mask)          -> logp_real
    #   row  [B]          -> allbits_unknown (empty mask)      -> log_z & mb_loss_begin
    #   rows [B+1:2B+1]   -> x_mask      with mask_curr        -> logp_x_mask
    #   rows [2B+1:3B+1]  -> x_mask_prev with mask_prev        -> logp_x_mask_prev + ll
    xs = jnp.concatenate([x, allbits_unknown, x_mask, x_mask_prev], axis=0)
    ms = jnp.concatenate([mask_full, allbits_unknown_mask, mask_curr, mask_prev], axis=0)
    n = xs.shape[0]

    x_int = (x + 1.0) * 0.5                                # image_float_to_int (binary)
    xsel = jnp.zeros((n, L), jnp.float32).at[2 * B + 1:3 * B + 1].set(x_int)
    msel = jnp.zeros((n, L), jnp.float32).at[2 * B + 1:3 * B + 1].set(
        mask_select_prev.astype(jnp.float32))

    logp_all, llsum_all = mam_net_fused(xs, ms, xsel, msel, params)

    logp_real = jnp.mean(logp_all[:B])
    log_z = logp_all[B]
    logp_begin = logp_all[B]
    logp_x_mask = logp_all[B + 1:2 * B + 1]
    logp_x_mask_prev = logp_all[2 * B + 1:3 * B + 1]
    ll = llsum_all[2 * B + 1:3 * B + 1]                    # masked Categorical log-prob sum

    # eval_mar_bl_loss
    logp_x_mask_from_prev = ll + logp_x_mask_prev
    diff = logp_x_mask - logp_x_mask_from_prev
    mb_loss = jnp.mean(diff ** 2)                          # MSE vs zeros

    # eval_mar_bl_x_begin : MSE(logp(all-unknown), LogZ=0)
    mb_loss_begin = jnp.mean((logp_begin - 0.0) ** 2)

    # TODO(synk): cfg.include_onpolicy branch (Gibbs censor_and_sample on a replay
    # buffer) is disabled here (include_onpolicy=False), matching the simplest path.
    loss = L * mb_loss + mb_loss_begin
    return loss, logp_real, log_z, mb_loss, mb_loss_begin


def init_params(key):
    k1, k2, k3, k4 = jax.random.split(key, 4)
    w1 = 0.1 * jax.random.normal(k1, (F_IN_PAD, HIDDEN), jnp.float32)
    b1 = 0.01 * jax.random.normal(k2, (1, HIDDEN), jnp.float32)
    w2 = 0.1 * jax.random.normal(k3, (HIDDEN, F_OUT_PAD), jnp.float32)
    b2 = 0.01 * jax.random.normal(k4, (1, F_OUT_PAD), jnp.float32)
    # zero the padded regions so the net is exactly an (F_IN -> HIDDEN -> F_OUT) MLP;
    # the extra rows/cols are inert lane padding (and carry xsel/msel in feat).
    w1 = w1.at[F_IN:, :].set(0.0)
    w2 = w2.at[:, F_OUT:].set(0.0)
    b2 = b2.at[:, F_OUT:].set(0.0)
    return (w1, b1, w2, b2)


if __name__ == "__main__":
    key = jax.random.PRNGKey(0)
    k_x, k_p, k_fwd = jax.random.split(key, 3)

    B = 2
    bits = jax.random.bernoulli(k_x, 0.5, (B, L))
    x = jnp.where(bits, 1.0, -1.0).astype(jnp.float32)     # binary bits in {-1, +1}

    params = init_params(k_p)
    outs = jax.jit(mam_forward)(x, params, k_fwd)
    outs = jax.block_until_ready(outs)
    loss, logp_real, log_z, mb_loss, mb_loss_begin = outs
    assert loss.shape == () and logp_real.shape == () and log_z.shape == ()
    print("KERNEL_OK")
</pallas_src>

<mosaic_0001>
module attributes {stable_mosaic.version = 11 : i64} {
  func.func @_mam_fused_kernel(%arg0: i32, %arg1: memref<16x128xbf16, #tpu.memory_space<vmem>>, %arg2: memref<128x128xbf16, #tpu.memory_space<vmem>>, %arg3: memref<1x128xf32, #tpu.memory_space<vmem>>, %arg4: memref<128x128xbf16, #tpu.memory_space<vmem>>, %arg5: memref<1x128xf32, #tpu.memory_space<vmem>>, %arg6: memref<16x128xf32, #tpu.memory_space<vmem>>) attributes {dimension_semantics = [#tpu.dimension_semantics<parallel>], iteration_bounds = array<i64: 1>, scalar_prefetch = 0 : i64, scratch_operands = 0 : i64, tpu.core_type = #tpu.core_type<tc>, window_params = [{transform_indices = @transform_0, window_bounds = array<i64: 16, 128>}, {pipeline_mode = #tpu.pipeline_mode<synchronous>, transform_indices = @transform_1, window_bounds = array<i64: 128, 128>}, {pipeline_mode = #tpu.pipeline_mode<synchronous>, transform_indices = @transform_2, window_bounds = array<i64: 1, 128>}, {pipeline_mode = #tpu.pipeline_mode<synchronous>, transform_indices = @transform_3, window_bounds = array<i64: 128, 128>}, {pipeline_mode = #tpu.pipeline_mode<synchronous>, transform_indices = @transform_4, window_bounds = array<i64: 1, 128>}, {transform_indices = @transform_5, window_bounds = array<i64: 16, 128>}]} {
    %c0 = arith.constant 0 : index
    %c0_0 = arith.constant 0 : index
    %0 = vector.load %arg1[%c0, %c0_0] : memref<16x128xbf16, #tpu.memory_space<vmem>>, vector<16x128xbf16>
    %c0_1 = arith.constant 0 : index
    %c0_2 = arith.constant 0 : index
    %1 = vector.load %arg2[%c0_1, %c0_2] : memref<128x128xbf16, #tpu.memory_space<vmem>>, vector<128x128xbf16>
    %cst = arith.constant dense<0.000000e+00> : vector<16x128xf32>
    %2 = tpu.matmul %0, %1, %cst {dimension_numbers = #tpu.dot_dimension_numbers<[1], [0], [0], [1], [0, 0, 1, 1], [], []>} : vector<16x128xbf16>, vector<128x128xbf16>, vector<16x128xf32> -> vector<16x128xf32>
    %c0_3 = arith.constant 0 : index
    %c0_4 = arith.constant 0 : index
    %3 = vector.load %arg3[%c0_3, %c0_4] : memref<1x128xf32, #tpu.memory_space<vmem>>, vector<1x128xf32>
    %4 = vector.broadcast %3 : vector<1x128xf32> to vector<16x128xf32>
    %5 = arith.addf %2, %4 : vector<16x128xf32>
    %cst_5 = arith.constant 0.000000e+00 : f32
    %6 = vector.broadcast %cst_5 : f32 to vector<16x128xf32>
    %7 = arith.maximumf %5, %6 : vector<16x128xf32>
    %8 = arith.truncf %7 : vector<16x128xf32> to vector<16x128xbf16>
    %c0_6 = arith.constant 0 : index
    %c0_7 = arith.constant 0 : index
    %9 = vector.load %arg4[%c0_6, %c0_7] : memref<128x128xbf16, #tpu.memory_space<vmem>>, vector<128x128xbf16>
    %cst_8 = arith.constant dense<0.000000e+00> : vector<16x128xf32>
    %10 = tpu.matmul %8, %9, %cst_8 {dimension_numbers = #tpu.dot_dimension_numbers<[1], [0], [0], [1], [0, 0, 1, 1], [], []>} : vector<16x128xbf16>, vector<128x128xbf16>, vector<16x128xf32> -> vector<16x128xf32>
    %c0_9 = arith.constant 0 : index
    %c0_10 = arith.constant 0 : index
    %11 = vector.load %arg5[%c0_9, %c0_10] : memref<1x128xf32, #tpu.memory_space<vmem>>, vector<1x128xf32>
    %12 = vector.broadcast %11 : vector<1x128xf32> to vector<16x128xf32>
    %13 = arith.addf %10, %12 : vector<16x128xf32>
    %14 = vector.extract_strided_slice %13 {offsets = [0, 0], sizes = [16, 16], strides = [1, 1]} : vector<16x128xf32> to vector<16x16xf32>
    %15 = vector.extract_strided_slice %13 {offsets = [0, 16], sizes = [16, 1], strides = [1, 1]} : vector<16x128xf32> to vector<16x1xf32>
    %c0_11 = arith.constant 0 : index
    %c64 = arith.constant 64 : index
    %16 = vector.load %arg1[%c0_11, %c64] : memref<16x128xbf16, #tpu.memory_space<vmem>>, vector<16x32xbf16>
    %17 = arith.extf %16 : vector<16x32xbf16> to vector<16x32xf32>
    %18 = vector.extract_strided_slice %17 {offsets = [0, 0], sizes = [16, 16], strides = [1, 1]} : vector<16x32xf32> to vector<16x16xf32>
    %19 = vector.extract_strided_slice %17 {offsets = [0, 16], sizes = [16, 16], strides = [1, 1]} : vector<16x32xf32> to vector<16x16xf32>
    %cst_12 = arith.constant 2.000000e+00 : f32
    %20 = vector.broadcast %cst_12 : f32 to vector<16x16xf32>
    %21 = arith.mulf %20, %18 : vector<16x16xf32>
    %cst_13 = arith.constant 1.000000e+00 : f32
    %22 = vector.broadcast %cst_13 : f32 to vector<16x16xf32>
    %23 = arith.subf %21, %22 : vector<16x16xf32>
    %24 = arith.mulf %14, %23 : vector<16x16xf32>
    %cst_14 = arith.constant 0.000000e+00 : f32
    %25 = vector.broadcast %cst_14 : f32 to vector<16x16xf32>
    %26 = arith.minimumf %24, %25 : vector<16x16xf32>
    %27 = math.absf %24 : vector<16x16xf32>
    %cst_15 = arith.constant 0.000000e+00 : f32
    %28 = vector.broadcast %cst_15 : f32 to vector<16x16xf32>
    %29 = arith.subf %28, %27 : vector<16x16xf32>
    %30 = math.exp %29 : vector<16x16xf32>
    %cst_16 = arith.constant 1.000000e+00 : f32
    %31 = vector.broadcast %cst_16 : f32 to vector<16x16xf32>
    %32 = arith.addf %31, %30 : vector<16x16xf32>
    %33 = math.log %32 : vector<16x16xf32>
    %34 = arith.subf %26, %33 : vector<16x16xf32>
    %35 = arith.mulf %34, %19 : vector<16x16xf32>
    %cst_17 = arith.constant dense<0.000000e+00> : vector<16xf32>
    %36 = vector.multi_reduction <add>, %35, %cst_17 [1] : vector<16x16xf32> to vector<16xf32>
    %37 = vector.shape_cast %36 : vector<16xf32> to vector<16x1xf32>
    %38 = tpu.iota {dimensions = array<i32: 1>} : vector<16x128xi32>
    %c64_i32 = arith.constant 64 : i32
    %39 = vector.broadcast %c64_i32 : i32 to vector<16x128xi32>
    %40 = arith.cmpi slt, %38, %39 : vector<16x128xi32>
    %41 = vector.shape_cast %15 : vector<16x1xf32> to vector<16x1xf32>
    %42 = vector.broadcast %41 : vector<16x1xf32> to vector<16x128xf32>
    %43 = vector.shape_cast %37 : vector<16x1xf32> to vector<16x1xf32>
    %44 = vector.broadcast %43 : vector<16x1xf32> to vector<16x128xf32>
    %45 = arith.select %40, %42, %44 : vector<16x128xi1>, vector<16x128xf32>
    %c0_18 = arith.constant 0 : index
    %c0_19 = arith.constant 0 : index
    %46 = vector.load %arg6[%c0_18, %c0_19] : memref<16x128xf32, #tpu.memory_space<vmem>>, vector<16x128xf32>
    tpu.vector_store %arg6[%c0_18, %c0_19], %45 {strides = array<i32>} : memref<16x128xf32, #tpu.memory_space<vmem>>, vector<16x128xf32>,
    return
  }
  func.func @transform_0(%arg0: i32) -> (i32, i32) {
    %c0_i32 = arith.constant 0 : i32
    %c0_i32_0 = arith.constant 0 : i32
    return %arg0, %c0_i32 : i32, i32
  }
  func.func @transform_1(%arg0: i32) -> (i32, i32) {
    %c0_i32 = arith.constant 0 : i32
    %c0_i32_0 = arith.constant 0 : i32
    %c0_i32_1 = arith.constant 0 : i32
    return %c0_i32, %c0_i32_0 : i32, i32
  }
  func.func @transform_2(%arg0: i32) -> (i32, i32) {
    %c0_i32 = arith.constant 0 : i32
    %c0_i32_0 = arith.constant 0 : i32
    %c0_i32_1 = arith.constant 0 : i32
    return %c0_i32, %c0_i32_0 : i32, i32
  }
  func.func @transform_3(%arg0: i32) -> (i32, i32) {
    %c0_i32 = arith.constant 0 : i32
    %c0_i32_0 = arith.constant 0 : i32
    %c0_i32_1 = arith.constant 0 : i32
    return %c0_i32, %c0_i32_0 : i32, i32
  }
  func.func @transform_4(%arg0: i32) -> (i32, i32) {
    %c0_i32 = arith.constant 0 : i32
    %c0_i32_0 = arith.constant 0 : i32
    %c0_i32_1 = arith.constant 0 : i32
    return %c0_i32, %c0_i32_0 : i32, i32
  }
  func.func @transform_5(%arg0: i32) -> (i32, i32) {
    %c0_i32 = arith.constant 0 : i32
    %c0_i32_0 = arith.constant 0 : i32
    return %arg0, %c0_i32 : i32, i32
  }
}

</mosaic_0001>

<bundles_post_ra>
// kernel: mam_forward.1
= control target key start
LH: loop header
LB: loop body
LE: loop exit
PB: predicated region body
PF: predicated region fallthrough
CT: control target
= control target key end

     0   :  { %s374_s28 = smov 48   ;;  %s375_s29 = smov 64   ;;  %v376_v33 = vmov 16   ;;  %vm239_vm0 = vcmask 130048   ;;  %s473_s1 = inlined_call_operand.vmem [shape: bf16[128,128], index: 1, kind: input, shape index: {}]   ;;  %s474_s3 = inlined_call_operand.vmem [shape: bf16[128,128], index: 3, kind: input, shape index: {}]   ;;  %s475_s2 = inlined_call_operand.vmem [shape: f32[1,128], index: 2, kind: input, shape index: {}]   ;;  %s476_s0 = inlined_call_operand.vmem [shape: bf16[16,128], index: 0, kind: input, shape index: {}]   ;;  %s477_s4 = inlined_call_operand.vmem [shape: f32[1,128], index: 4, kind: input, shape index: {}]   ;;  %s478_s5 = inlined_call_operand.vmem [shape: f32[16,128], index: 5, kind: output, shape index: {}]  }
   0x1   :  { %v345_v0 = vld [vmem:[%s473_s1 + $0x38] sm:$0xff]  ;;  %v344_v1 = vld [vmem:[%s473_s1 + $0x30] sm:$0xff]  ;;  %v343_v4 = vld [vmem:[%s473_s1 + $0x28] sm:$0xff]  ;;  %363 = vset.pattern.permute.xlu0 %v376_v33  ;;  %362 = vset.pattern.permute.xlu2 %v376_v33 }
   0x2   :  { %96 = vmatpush.bf16.msra.mxu0 %v345_v0  ;;  %v353_v2 = vld [vmem:[%s474_s3 + $0x38] sm:$0xff]  ;;  %v352_v3 = vld [vmem:[%s474_s3 + $0x30] sm:$0xff]  ;;  %v351_v5 = vld [vmem:[%s474_s3 + $0x28] sm:$0xff] }
   0x3   :  { %181 = vmatpush.bf16.msra.mxu1 %v353_v2  ;;  %v342_v6 = vld [vmem:[%s473_s1 + $0x20] sm:$0xff]  ;;  %v341_v8 = vld [vmem:[%s473_s1 + $0x18] sm:$0xff]  ;;  %v340_v9 = vld [vmem:[%s473_s1 + $0x10] sm:$0xff] }
   0x4   :  { %v350_v7 = vld [vmem:[%s474_s3 + $0x20] sm:$0xff]  ;;  %v339_v10 = vld [vmem:[%s473_s1 + $0x8] sm:$0xff]  ;;  %v349_v13 = vld [vmem:[%s474_s3 + $0x18] sm:$0xff] }
   0x5   :  { %v338_v11 = vld [vmem:[%s473_s1] sm:$0xff]  ;;  %v348_v14 = vld [vmem:[%s474_s3 + $0x10] sm:$0xff]  ;;  %v347_v15 = vld [vmem:[%s474_s3 + $0x8] sm:$0xff] }
   0x6   :  { %97 = vmatpush.bf16.msra.mxu0 %v344_v1  ;;  %v337_v12 = vld [vmem:[%s476_s0] sm:$0xff] }
   0x7   :  { %182 = vmatpush.bf16.msra.mxu1 %v352_v3  ;;  %v346_v16 = vld [vmem:[%s474_s3] sm:$0xff] }
   0x8   :  { %v20_v17 = vld [vmem:[%s476_s0] sm:$0xff]  }
   0x9   :  { %v195_v18 = vunpack.c.l.bf16 %v20_v17  ;;  %v196_v19 = vunpack.c.h.bf16 %v20_v17  ;;  %v364_v26 = vld [vmem:[%s475_s2] ss:$0 sm:$0xff] }
   0xa   :  { %98 = vmatpush.bf16.msra.mxu0 %v343_v4  ;;  %v365_v34 = vld [vmem:[%s477_s4] ss:$0 sm:$0xff]  ;;  %v246_v4 = vlaneseq }
   0xb   :  { %183 = vmatpush.bf16.msra.mxu1 %v351_v5  ;;  %v197_v20 = vmul.f32 2.0, %v195_v18  ;;  %v357_v21 = vpack.i.bf16 %v196_v19, %v195_v18  ;;  %v198_v23 = vmul.f32 2.0, %v196_v19 }
   0xc   :  { %v247_v5 = vand.u32 127, %v246_v4 }
   0xd   :  { %v335_v22 = vadd.f32 -1.0, %v197_v20  ;;  %358 = vrot.lane.b32.xlu1 %v357_v21, %s374_s28  ;;  %v336_v24 = vadd.f32 -1.0, %v198_v23 }
   0xe   :  { %99 = vmatpush.bf16.msra.mxu0 %v342_v6  ;;  %vm248_vm1 = vcmp.lt.s32.totalorder %v247_v5, 64 }
   0xf   :  { %184 = vmatpush.bf16.msra.mxu1 %v350_v7  ;;  %203 = vrot.lane.b32.xlu0 %v335_v22, %s375_s29 }
  0x12   :  { %100 = vmatpush.bf16.msra.mxu0 %v341_v8 }
  0x13   :  { %185 = vmatpush.bf16.msra.mxu1 %v349_v13 }
  0x16   :  { %101 = vmatpush.bf16.msra.mxu0 %v340_v9 }
  0x17   :  { %186 = vmatpush.bf16.msra.mxu1 %v348_v14  ;;  %205 = vrot.lane.b32.xlu0 %v336_v24, %s375_s29 }
  0x1a   :  { %102 = vmatpush.bf16.msra.mxu0 %v339_v10 }
  0x1b   :  { %187 = vmatpush.bf16.msra.mxu1 %v347_v15 }
  0x1e   :  { %103 = vmatpush.bf16.msra.mxu0 %v338_v11 }
  0x1f   :  { %188 = vmatpush.bf16.msra.mxu1 %v346_v16 }
  0x21   :  { %104 = vmatmul.bf16.vlgmr.msra.gmra.mxu0 %v337_v12 }
  0x7f   :  { %v359_v51 = vpop.permute.xlu1 %358 }
  0x80   :  { %v360_v56 = vunpack.i.l.bf16 %v359_v51  ;;  %v361_v63 = vunpack.i.h.bf16 %v359_v51 }
  0x81   :  { %v204_v35 = vpop.permute.xlu0 %203 }
  0x89   :  { %v206_v42 = vpop.permute.xlu0 %205 }
  0x9e   :  { %v105_v25 = vpop.f32.mrf.mxu0 }
  0x9f   :  { %v106_v27 = vadd.f32 %v364_v26, %v105_v25 }
  0xa1   :  { %v110_v30 = vmax.f32 %v106_v27, 0.0 }
  0xa6   :  { %v107_v28 = vpop.f32.mrf.mxu0 }
  0xa7   :  { %v108_v29 = vadd.f32 %v364_v26, %v107_v28 }
  0xa9   :  { %v111_v31 = vmax.f32 %v108_v29, 0.0 }
  0xab   :  { %v112_v32 = vpack.c.bf16 %v111_v31, %v110_v30 }
  0xad   :  { %189 = vmatmul.bf16.vlgmr.msra.gmra.mxu1 %v112_v32 }
 0x12a   :  { %v190_v36 = vpop.f32.mrf.mxu1 }
 0x12b   :  { %v191_v37 = vadd.f32 %v365_v34, %v190_v36 }
 0x12d   :  { %v209_v38 = vmul.f32 %v204_v35, %v191_v37 }
 0x12f   :  { %v213_v39 = vand.u32 2147483647, %v209_v38  ;;  %v211_v55 = vmin.f32 %v209_v38, 0.0 }
 0x131   :  { %v215_v40 = vsub.f32 0.0, %v213_v39 }
 0x132   :  { %v192_v41 = vpop.f32.mrf.mxu1 }
 0x133   :  { %v217_v43 = vmul.f32 1.442695, %v215_v40  ;;  %v193_v44 = vadd.f32 %v365_v34, %v192_v41 }
 0x135   :  { %366 = vpow2.f32 %v217_v43  ;;  %v210_v45 = vmul.f32 %v206_v42, %v193_v44  ;;  %256 = vperm.xlu0 %363, %v193_v44  }
 0x137   :  { %v214_v46 = vand.u32 2147483647, %v210_v45  ;;  %v212_v62 = vmin.f32 %v210_v45, 0.0 }
 0x139   :  { %v216_v47 = vsub.f32 0.0, %v214_v46 }
 0x13b   :  { %v367_v48 = vpop.eup %366  ;;  %v219_v49 = vmul.f32 1.442695, %v216_v47 }
 0x13c   :  { %v221_v50 = vadd.f32 1.0, %v367_v48 }
 0x13d   :  { %368 = vpow2.f32 %v219_v49 }
 0x13e   :  { %370 = vlog2.f32 %v221_v50 }
 0x143   :  { %v369_v52 = vpop.eup %368 }
 0x144   :  { %v371_v53 = vpop.eup %370  ;;  %v222_v54 = vadd.f32 1.0, %v369_v52 }
 0x145   :  { %v224_v57 = vmul.f32 0.6931472, %v371_v53 }
 0x146   :  { %372 = vlog2.f32 %v222_v54 }
 0x147   :  { %v227_v58 = vsub.f32 %v211_v55, %v224_v57 }
 0x149   :  { %v237_v59 = vmul.f32 %v360_v56, %v227_v58 }
 0x14b   :  { %v240_v60 = vsel %vm239_vm0, %v237_v59, 0.0 }
 0x14c   :  { %v373_v61 = vpop.eup %372  ;;  %241 = vadd.xlane.f32.xlu1 %v240_v60 }
 0x14d   :  { %v226_v0 = vmul.f32 0.6931472, %v373_v61 }
 0x14f   :  { %v228_v1 = vsub.f32 %v212_v62, %v226_v0 }
 0x151   :  { %v238_v2 = vmul.f32 %v361_v63, %v228_v1 }
 0x153   :  { %v243_v3 = vsel %vm239_vm0, %v238_v2, 0.0 }
 0x154   :  { %244 = vadd.xlane.f32.xlu2 %v243_v3 }
 0x16c   :  { %251 = vperm.xlu2 %362, %v191_v37  }
 0x1a7   :  { %v257_v6 = vpop.permute.xlu0 %256 }
 0x1bf   :  { %v242_v9 = vpop.xlane.xlu1 %241 }
 0x1c7   :  { %v245_v7 = vpop.xlane.xlu2 %244 }
 0x1c8   :  { %v260_v8 = vsel %vm248_vm1, %v257_v6, %v245_v7 }
 0x1c9   :  { %262 = vst [vmem:[%s478_s5 + $0x8] sm:$0xff] %v260_v8 }
 0x1cf   :  { %v252_v10 = vpop.permute.xlu2 %251 }
 0x1d0   :  { %v259_v11 = vsel %vm248_vm1, %v252_v10, %v242_v9 }
 0x1d1   :  { %261 = vst [vmem:[%s478_s5] sm:$0xff] %v259_v11 }

</bundles_post_ra>
